<compile_context>
chip_gen: v7x
topology: tpu7x:2x2x1
jax: 0.10.0
libtpu: 0.0.40
codegen_flags: <defaults>
</compile_context>

<pallas_src>
import jax
import jax.numpy as jnp
from jax import lax
from jax.experimental import pallas as pl
from jax.experimental.pallas import tpu as pltpu

_SMOOTH = 1e-4
_LANE_WIDTHS = (512, 256, 128)          # preferred lane-dense slab widths
_TARGET_DMA_BYTES = 4 * 1024 * 1024     # both inputs together, per grid step
_GROUP_ELEMS = 64 * 1024                # per-group working set (~256 KiB f32)


def _num_tensorcores():
    """Best-effort TensorCore count of the local device (v7x / megacore = 2)."""
    try:
        info = pltpu.get_tpu_info()
        for attr in ("num_cores", "core_count", "num_tensorcores",
                     "tensor_core_count", "cores_per_chip"):
            v = getattr(info, attr, None)
            if isinstance(v, int) and v >= 1:
                return min(int(v), 2)
    except Exception:
        pass
    try:
        kind = jax.devices()[0].device_kind.lower()
        if ("v4" in kind) or ("v5p" in kind) or ("v7" in kind):
            return 2
    except Exception:
        pass
    return 1  # safe default: plain 1-D reduction grid


def _make_dice_kernel(rows, bm, gr, w, steps, n_blocks, ragged, nc):
    """Reduction kernel over a (rows, w) slab tiled into (bm, w) blocks,
    each processed as bm//gr row-groups of (gr, w)."""
    n_groups = bm // gr
    fold_groups = gr // 8 if (gr % 8 == 0 and gr > 8) else None
    acc_rows = 8 if fold_groups is not None else gr

    def fold(x):
        # (gr, w) -> (acc_rows, w). Splitting the sublane axis at a multiple
        # of 8 is layout-preserving, so this is pure vreg adds on the VPU.
        # The single cross-lane reduction happens once, in the epilogue.
        if fold_groups is None:
            return x
        return x.reshape(fold_groups, 8, w).sum(axis=0)

    def kernel(yt_ref, yp_ref, out_ref, acc_tp, acc_s):
        if nc == 1:
            c = 0
            i = pl.program_id(0)        # reduction axis ("arbitrary")
        else:
            c = pl.program_id(0)        # core-split axis ("parallel")
            i = pl.program_id(1)        # reduction axis ("arbitrary")

        @pl.when(i == 0)
        def _():
            acc_tp[...] = jnp.zeros_like(acc_tp)
            acc_s[...] = jnp.zeros_like(acc_s)

        blk = c * steps + i

        def load_group(g):
            if n_groups == 1:
                t = yt_ref[...]
                p = yp_ref[...]
            else:
                r0 = g * gr
                if not isinstance(r0, int):
                    r0 = pl.multiple_of(r0, 8)
                t = yt_ref[pl.ds(r0, gr), :]
                p = yp_ref[pl.ds(r0, gr), :]
            # Cast after the (possibly narrow-dtype) DMA; free on the VPU.
            return t.astype(jnp.float32), p.astype(jnp.float32)

        def accum(t, p):
            acc_tp[...] += fold(t * p)
            acc_s[...] += fold(t + p)     # sum(t)+sum(p) is all the loss needs

        def plain_body(g, carry):
            t, p = load_group(g)
            accum(t, p)
            return carry

        def masked_body(g, carry):
            # Rows past the end of the slab hold undefined VMEM contents;
            # zero them before they touch the sums (only in the last block).
            t, p = load_group(g)
            row = lax.broadcasted_iota(jnp.int32, (gr, w), 0)
            valid = (blk * bm + g * gr + row) < rows
            zero = jnp.zeros_like(t)
            accum(jnp.where(valid, t, zero), jnp.where(valid, p, zero))
            return carry

        def run(body):
            if n_groups == 1:
                body(0, 0)
            else:
                lax.fori_loop(0, n_groups, body, 0, unroll=n_groups <= 8)

        if ragged:
            @pl.when(blk == n_blocks - 1)
            def _():
                run(masked_body)

            @pl.when(blk != n_blocks - 1)
            def _():
                run(plain_body)
        else:
            run(plain_body)

        @pl.when(i == steps - 1)
        def _():
            out_ref[0, 0] = jnp.sum(acc_tp[...])
            out_ref[0, 1] = jnp.sum(acc_s[...])

    return kernel, acc_rows


def dice_coefficient_loss(y_true, y_pred, *, block_bytes=None, group_elems=None,
                          num_cores=None):
    """1 - 2*sum(t*p)/(sum(t)+sum(p)+1e-4) -> shape (1,) float32."""
    assert y_true.shape == y_pred.shape
    n = 1
    for d in y_true.shape:
        n *= int(d)

    f32 = jnp.float32
    yt_flat = jnp.reshape(y_true, (n,))
    yp_flat = jnp.reshape(y_pred, (n,))

    # Widest lane-dense slab width dividing n (zero-copy reshape); else 128
    # with a small jnp-handled tail.
    w = None
    for cand in _LANE_WIDTHS:
        if n >= cand and n % cand == 0:
            w = cand
            break
    if w is None:
        w = 128
    n_main = (n // w) * w

    if n_main == 0:
        # Degenerate tiny input: not worth a kernel launch.
        t = yt_flat.astype(f32)
        p = yp_flat.astype(f32)
        inter = jnp.sum(t * p)
        ssum = jnp.sum(t) + jnp.sum(p)
        loss = 1.0 - 2.0 * inter / (ssum + jnp.float32(_SMOOTH))
        return jnp.reshape(loss.astype(f32), (1,))

    tail_inter = jnp.zeros((), f32)
    tail_sum = jnp.zeros((), f32)
    if n_main < n:
        # <128-element tail summed host-side (negligible); the prefix slice
        # below costs one XLA slice pass only for ragged n — the common case
        # (n % 128 == 0) is the zero-copy reshape-only path.
        tt = yt_flat[n_main:].astype(f32)
        tp_ = yp_flat[n_main:].astype(f32)
        tail_inter = jnp.sum(tt * tp_)
        tail_sum = jnp.sum(tt) + jnp.sum(tp_)
        yt_main = yt_flat[:n_main]
        yp_main = yp_flat[:n_main]
    else:
        yt_main = yt_flat
        yp_main = yp_flat

    yt2d = jnp.reshape(yt_main, (-1, w))
    yp2d = jnp.reshape(yp_main, (-1, w))
    rows = n_main // w

    # ---- byte-based tiling plan ----
    it_sum = jnp.dtype(y_true.dtype).itemsize + jnp.dtype(y_pred.dtype).itemsize
    tgt_bytes = _TARGET_DMA_BYTES if block_bytes is None else int(block_bytes)
    grp_elems = _GROUP_ELEMS if group_elems is None else int(group_elems)

    block_elems_cap = max(w * 8, tgt_bytes // it_sum)
    block_rows_cap = max(8, (block_elems_cap // w) // 8 * 8)
    gr_target = max(8, (grp_elems // w) // 8 * 8)

    if rows <= gr_target:
        gr = rows                        # one block, one group
        bm = rows
    else:
        gr = min(gr_target, block_rows_cap)
        gpb = min(max(1, block_rows_cap // gr), max(1, rows // gr))
        bm = gr * gpb
    n_blocks = pl.cdiv(rows, bm)

    # ---- dual-TensorCore split (v7x / megacore): use both cores whenever
    # there are >= 2 blocks; rebalance the block size so the block count
    # divides the core count, else fall back to a single-core grid. ----
    cores = _num_tensorcores() if num_cores is None else max(1, int(num_cores))
    nc = 1
    if cores > 1 and n_blocks >= 2:
        if n_blocks % cores == 0:
            nc = cores
        else:
            for gpb2 in range(bm // gr, 0, -1):
                bm2 = gr * gpb2
                n2 = pl.cdiv(rows, bm2)
                if n2 >= cores and n2 % cores == 0:
                    bm, n_blocks, nc = bm2, n2, cores
                    break
    steps = n_blocks // nc
    ragged = (rows % bm) != 0

    kernel, acc_rows = _make_dice_kernel(rows, bm, gr, w, steps, n_blocks,
                                         ragged, nc)

    if nc == 1:
        grid = (steps,)
        in_map = lambda i: (i, 0)
        out_map = lambda i: (0, 0)
        dims = ("arbitrary",)
    else:
        grid = (nc, steps)
        in_map = lambda c, i: (c * steps + i, 0)
        out_map = lambda c, i: (c, 0)
        dims = ("parallel", "arbitrary")

    partials = pl.pallas_call(
        kernel,
        out_shape=jax.ShapeDtypeStruct((nc, 2), f32),
        grid_spec=pltpu.PrefetchScalarGridSpec(
            num_scalar_prefetch=0,
            grid=grid,
            in_specs=[pl.BlockSpec((bm, w), in_map),
                      pl.BlockSpec((bm, w), in_map)],
            out_specs=pl.BlockSpec((1, 2), out_map, memory_space=pltpu.SMEM),
            scratch_shapes=[pltpu.VMEM((acc_rows, w), f32)] * 2,
        ),
        compiler_params=pltpu.CompilerParams(dimension_semantics=dims),
        cost_estimate=pl.CostEstimate(
            flops=4 * n, transcendentals=0,
            bytes_accessed=n * it_sum + nc * 8),
    )(yt2d, yp2d)

    inter = jnp.sum(partials[:, 0]) + tail_inter
    ssum = jnp.sum(partials[:, 1]) + tail_sum
    loss = 1.0 - 2.0 * inter / (ssum + jnp.float32(_SMOOTH))
    return jnp.reshape(loss.astype(f32), (1,))


def _ref_loss(y_true, y_pred):
    return 1.0 - 2.0 * jnp.sum(y_true * y_pred) / (
        jnp.sum(y_true) + jnp.sum(y_pred) + 0.0001)


if __name__ == "__main__":
    key = jax.random.PRNGKey(0)
    k1, k2, k3, k4, k5, k6 = jax.random.split(key, 6)

    # Case 1: small NCHW inputs (batch=2, channels=4, spatial=16x16).
    y_true = (jax.random.uniform(k1, (2, 4, 16, 16)) > 0.5).astype(jnp.float32)
    y_pred = jax.random.uniform(k2, (2, 4, 16, 16), dtype=jnp.float32)
    loss = dice_coefficient_loss(y_true, y_pred)
    jax.block_until_ready(loss)
    assert loss.shape == (1,)
    assert jnp.allclose(loss[0], _ref_loss(y_true, y_pred), rtol=1e-5, atol=1e-6)

    # Case 2: exercises the folded (8, W) accumulator path.
    y_true2 = (jax.random.uniform(k3, (1, 8, 32, 32)) > 0.5).astype(jnp.float32)
    y_pred2 = jax.random.uniform(k4, (1, 8, 32, 32), dtype=jnp.float32)
    loss2 = dice_coefficient_loss(y_true2, y_pred2)
    jax.block_until_ready(loss2)
    assert jnp.allclose(loss2[0], _ref_loss(y_true2, y_pred2), rtol=1e-5, atol=1e-6)

    # Case 3: ragged element count (tail path), multi-block grid, row-group
    # loop, masked last block, and the 2-core grid variant (forced; safe on
    # single-TC chips where the "parallel" axis is just a serial loop).
    y_true3 = (jax.random.uniform(k5, (2, 3, 40, 41)) > 0.5).astype(jnp.float32)
    y_pred3 = jax.random.uniform(k6, (2, 3, 40, 41), dtype=jnp.float32)
    loss3 = dice_coefficient_loss(y_true3, y_pred3,
                                  block_bytes=24 * 1024,
                                  group_elems=1024,
                                  num_cores=2)
    jax.block_until_ready(loss3)
    assert jnp.allclose(loss3[0], _ref_loss(y_true3, y_pred3), rtol=1e-5, atol=1e-6)

    print("KERNEL_OK")
</pallas_src>

<mosaic_0001>
module attributes {stable_mosaic.version = 11 : i64} {
  func.func @kernel(%arg0: i32, %arg1: memref<4x512xf32, #tpu.memory_space<vmem>>, %arg2: memref<4x512xf32, #tpu.memory_space<vmem>>, %arg3: memref<1x2xf32, #tpu.memory_space<smem>>, %arg4: memref<4x512xf32, #tpu.memory_space<vmem>>, %arg5: memref<4x512xf32, #tpu.memory_space<vmem>>) attributes {dimension_semantics = [#tpu.dimension_semantics<arbitrary>], iteration_bounds = array<i64: 1>, scalar_prefetch = 0 : i64, scratch_operands = 2 : i64, tpu.core_type = #tpu.core_type<tc>, window_params = [{transform_indices = @transform_0, window_bounds = array<i64: 4, 512>}, {transform_indices = @transform_1, window_bounds = array<i64: 4, 512>}, {transform_indices = @transform_2, window_bounds = array<i64: 1, 2>}]} {
    %c0_i32 = arith.constant 0 : i32
    %0 = arith.cmpi eq, %arg0, %c0_i32 : i32
    %1 = arith.extui %0 : i1 to i32
    %c0_i32_0 = arith.constant 0 : i32
    %2 = arith.cmpi ne, %1, %c0_i32_0 : i32
    scf.if %2 {
      %cst = arith.constant 0.000000e+00 : f32
      %16 = vector.broadcast %cst : f32 to vector<4x512xf32>
      %c0_14 = arith.constant 0 : index
      %c0_15 = arith.constant 0 : index
      %17 = vector.load %arg4[%c0_14, %c0_15] : memref<4x512xf32, #tpu.memory_space<vmem>>, vector<4x512xf32>
      tpu.vector_store %arg4[%c0_14, %c0_15], %16 {strides = array<i32>} : memref<4x512xf32, #tpu.memory_space<vmem>>, vector<4x512xf32>,
      %cst_16 = arith.constant 0.000000e+00 : f32
      %18 = vector.broadcast %cst_16 : f32 to vector<4x512xf32>
      %c0_17 = arith.constant 0 : index
      %c0_18 = arith.constant 0 : index
      %19 = vector.load %arg5[%c0_17, %c0_18] : memref<4x512xf32, #tpu.memory_space<vmem>>, vector<4x512xf32>
      tpu.vector_store %arg5[%c0_17, %c0_18], %18 {strides = array<i32>} : memref<4x512xf32, #tpu.memory_space<vmem>>, vector<4x512xf32>,
    } else {
    }
    %c0 = arith.constant 0 : index
    %c0_1 = arith.constant 0 : index
    %3 = vector.load %arg1[%c0, %c0_1] : memref<4x512xf32, #tpu.memory_space<vmem>>, vector<4x512xf32>
    %c0_2 = arith.constant 0 : index
    %c0_3 = arith.constant 0 : index
    %4 = vector.load %arg2[%c0_2, %c0_3] : memref<4x512xf32, #tpu.memory_space<vmem>>, vector<4x512xf32>
    %c0_4 = arith.constant 0 : index
    %c0_5 = arith.constant 0 : index
    %5 = vector.load %arg4[%c0_4, %c0_5] : memref<4x512xf32, #tpu.memory_space<vmem>>, vector<4x512xf32>
    %6 = arith.mulf %3, %4 : vector<4x512xf32>
    %7 = arith.addf %5, %6 : vector<4x512xf32>
    %c0_6 = arith.constant 0 : index
    %c0_7 = arith.constant 0 : index
    %8 = vector.load %arg4[%c0_6, %c0_7] : memref<4x512xf32, #tpu.memory_space<vmem>>, vector<4x512xf32>
    tpu.vector_store %arg4[%c0_6, %c0_7], %7 {strides = array<i32>} : memref<4x512xf32, #tpu.memory_space<vmem>>, vector<4x512xf32>,
    %c0_8 = arith.constant 0 : index
    %c0_9 = arith.constant 0 : index
    %9 = vector.load %arg5[%c0_8, %c0_9] : memref<4x512xf32, #tpu.memory_space<vmem>>, vector<4x512xf32>
    %10 = arith.addf %3, %4 : vector<4x512xf32>
    %11 = arith.addf %9, %10 : vector<4x512xf32>
    %c0_10 = arith.constant 0 : index
    %c0_11 = arith.constant 0 : index
    %12 = vector.load %arg5[%c0_10, %c0_11] : memref<4x512xf32, #tpu.memory_space<vmem>>, vector<4x512xf32>
    tpu.vector_store %arg5[%c0_10, %c0_11], %11 {strides = array<i32>} : memref<4x512xf32, #tpu.memory_space<vmem>>, vector<4x512xf32>,
    %c0_i32_12 = arith.constant 0 : i32
    %13 = arith.cmpi eq, %arg0, %c0_i32_12 : i32
    %14 = arith.extui %13 : i1 to i32
    %c0_i32_13 = arith.constant 0 : i32
    %15 = arith.cmpi ne, %14, %c0_i32_13 : i32
    scf.if %15 {
      %c0_14 = arith.constant 0 : index
      %c0_15 = arith.constant 0 : index
      %16 = vector.load %arg4[%c0_14, %c0_15] : memref<4x512xf32, #tpu.memory_space<vmem>>, vector<4x512xf32>
      %17 = vector.shape_cast %16 : vector<4x512xf32> to vector<1x4x512xf32>
      %cst = arith.constant dense<0.000000e+00> : vector<1xf32>
      %18 = vector.multi_reduction <add>, %17, %cst [1, 2] : vector<1x4x512xf32> to vector<1xf32>
      %19 = vector.shape_cast %18 : vector<1xf32> to vector<1x1x1xf32>
      %20 = vector.extract %19[0, 0, 0] : f32 from vector<1x1x1xf32>
      %c0_16 = arith.constant 0 : index
      %c0_17 = arith.constant 0 : index
      %21 = memref.load %arg3[%c0_16, %c0_17] : memref<1x2xf32, #tpu.memory_space<smem>>
      memref.store %20, %arg3[%c0_16, %c0_17] : memref<1x2xf32, #tpu.memory_space<smem>>
      %c0_18 = arith.constant 0 : index
      %c0_19 = arith.constant 0 : index
      %22 = vector.load %arg5[%c0_18, %c0_19] : memref<4x512xf32, #tpu.memory_space<vmem>>, vector<4x512xf32>
      %23 = vector.shape_cast %22 : vector<4x512xf32> to vector<1x4x512xf32>
      %cst_20 = arith.constant dense<0.000000e+00> : vector<1xf32>
      %24 = vector.multi_reduction <add>, %23, %cst_20 [1, 2] : vector<1x4x512xf32> to vector<1xf32>
      %25 = vector.shape_cast %24 : vector<1xf32> to vector<1x1x1xf32>
      %26 = vector.extract %25[0, 0, 0] : f32 from vector<1x1x1xf32>
      %c0_21 = arith.constant 0 : index
      %c1 = arith.constant 1 : index
      %27 = memref.load %arg3[%c0_21, %c1] : memref<1x2xf32, #tpu.memory_space<smem>>
      memref.store %26, %arg3[%c0_21, %c1] : memref<1x2xf32, #tpu.memory_space<smem>>
    } else {
    }
    return
  }
  func.func @transform_0(%arg0: i32) -> (i32, i32) {
    %c0_i32 = arith.constant 0 : i32
    %c0_i32_0 = arith.constant 0 : i32
    return %arg0, %c0_i32 : i32, i32
  }
  func.func @transform_1(%arg0: i32) -> (i32, i32) {
    %c0_i32 = arith.constant 0 : i32
    %c0_i32_0 = arith.constant 0 : i32
    return %arg0, %c0_i32 : i32, i32
  }
  func.func @transform_2(%arg0: i32) -> (i32, i32) {
    %c0_i32 = arith.constant 0 : i32
    %c0_i32_0 = arith.constant 0 : i32
    %c0_i32_1 = arith.constant 0 : i32
    return %c0_i32, %c0_i32_0 : i32, i32
  }
}

</mosaic_0001>

<bundles_post_ra>
// kernel: tpu_custom_call.1
= control target key start
LH: loop header
LB: loop body
LE: loop exit
PB: predicated region body
PF: predicated region fallthrough
CT: control target
= control target key end

     0   :  { %7 = vsyncpa [#allocation5], 0  ;;  %s264_s0 = inlined_call_operand.hbm [shape: f32[4,512], index: 0, kind: input, shape index: {}]   ;;  %s265_s1 = inlined_call_operand.hbm [shape: f32[4,512], index: 1, kind: input, shape index: {}]   ;;  %s266_s2 = inlined_call_operand.hbm [shape: f32[1,2], index: 2, kind: output, shape index: {}]  }
   0x1   :  { %8 = vsyncpa [#allocation8], 0 }
   0x2   :  { %9 = vsyncpa [#allocation6], 0  ;;  %s202_s9 = smov [#allocation4]   ;;  %s203_s11 = smov [#allocation7]  }
   0x3   :  { %s16_s10 = sshll.u32 %s202_s9, 4  ;;  %s26_s12 = sshll.u32 %s203_s11, 4  ;;  %s17_s10 = int_to_ptr.vmem [resolvable:$true] %s16_s10  ;;  %s27_s12 = int_to_ptr.vmem [resolvable:$true] %s26_s12 }
   0x4   :  { %s142_s15 = scalar_lea.hbm %s264_s0, 256 }
   0x5   :  { %p143_p0 = scmp.ne.s32.totalorder %s264_s0, %s142_s15  ;;  %p146_p1 = scmp.lt.u32.totalorder %s142_s15, %s264_s0 }
   0x7   :  { %p148_p2 = pnand %p146_p1, %p143_p0 }
   0x9   :  { %151 = shalt.err (!%p148_p2)
}
   0xa   :  { %s152_s20 = scalar_lea.vmem %s17_s10, 256  ;;  %p157_p4 = scmp.lt.s32.totalorder %s17_s10, %s17_s10 }
   0xb   :  { %p153_p3 = scmp.ne.s32.totalorder %s17_s10, %s152_s20  ;;  %p158_p5 = scmp.lt.s32.totalorder %s152_s20, %s152_s20 }
   0xd   :  { %p159_p6 = por %p158_p5, %p157_p4 }
   0xf   :  { %p160_p7 = pnand %p159_p6, %p153_p3 }
  0x11   :  { %163 = shalt.err (!%p160_p7)
}
  0x12   :  { %19 = dma.hbm_to_vmem [thread:$0]  %s264_s0, 256, %s17_s10, [#allocation5]  }
  0x13   :  { %s164_s25 = scalar_lea.hbm %s265_s1, 256 }
  0x14   :  { %p165_p8 = scmp.ne.s32.totalorder %s265_s1, %s164_s25  ;;  %p168_p9 = scmp.lt.u32.totalorder %s164_s25, %s265_s1 }
  0x16   :  { %p170_p10 = pnand %p168_p9, %p165_p8 }
  0x18   :  { %173 = shalt.err (!%p170_p10)
}
  0x19   :  { %s174_s30 = scalar_lea.vmem %s27_s12, 256  ;;  %p179_p12 = scmp.lt.s32.totalorder %s27_s12, %s27_s12 }
  0x1a   :  { %p175_p11 = scmp.ne.s32.totalorder %s27_s12, %s174_s30  ;;  %p180_p13 = scmp.lt.s32.totalorder %s174_s30, %s174_s30 }
  0x1c   :  { %p181_p0 = por %p180_p13, %p179_p12 }
  0x1e   :  { %p182_p1 = pnand %p181_p0, %p175_p11 }
  0x20   :  { %185 = shalt.err (!%p182_p1)
}
  0x21   :  { %29 = dma.hbm_to_vmem [thread:$0]  %s265_s1, 256, %s27_s12, [#allocation8]  }
  0x22   :  { %196 = dma.done.wait [#allocation5], 256  }
  0x23   :  { %197 = vsyncadd [#allocation5], 4294967040 }
  0x24   :  { %198 = dma.done.wait [#allocation8], 256  }
  0x25   :  { %199 = vsyncadd [#allocation8], 4294967040  ;;  %v44_v0 = vld [vmem:[#allocation4] sm:$0xff]  ;;  %v45_v1 = vld [vmem:[#allocation4 + $0x8] sm:$0xff]  ;;  %vm75_vm0 = vcmask 1043456   ;;  %s186_s7 = scalar_lea.hbm %s266_s2, 16 }
  0x26   :  { %v46_v2 = vld [vmem:[#allocation7] sm:$0xff]  ;;  %v47_v3 = vld [vmem:[#allocation7 + $0x8] sm:$0xff]  ;;  %p187_p2 = scmp.ne.s32.totalorder %s266_s2, %s186_s7  ;;  %p190_p3 = scmp.lt.u32.totalorder %s186_s7, %s266_s2 }
  0x27   :  { %v50_v4 = vmul.f32 %v46_v2, %v44_v0  ;;  %v58_v5 = vadd.f32 %v46_v2, %v44_v0  ;;  %v51_v6 = vmul.f32 %v47_v3, %v45_v1  ;;  %v59_v7 = vadd.f32 %v47_v3, %v45_v1 }
  0x28   :  { %p192_p4 = pnand %p190_p3, %p187_p2 }
  0x29   :  { %v71_v8 = vcombine.high %v50_v4, %v50_v4  ;;  %v76_v9 = vsel %vm75_vm0, %v50_v4, 0.0  ;;  %v98_v10 = vcombine.high %v58_v5, %v58_v5  ;;  %v102_v11 = vsel %vm75_vm0, %v58_v5, 0.0 }
  0x2a   :  { %v72_v12 = vcombine.high %v51_v6, %v51_v6  ;;  %v79_v13 = vsel %vm75_vm0, %v51_v6, 0.0  ;;  %v99_v15 = vcombine.high %v59_v7, %v59_v7  ;;  %v105_v17 = vsel %vm75_vm0, %v59_v7, 0.0 }
  0x2b   :  { %v77_v14 = vsel %vm75_vm0, %v71_v8, 0.0  ;;  %v103_v16 = vsel %vm75_vm0, %v98_v10, 0.0 }
  0x2c   :  { %v78_v18 = vadd.f32 %v77_v14, %v76_v9  ;;  %v104_v19 = vadd.f32 %v103_v16, %v102_v11  ;;  %v81_v20 = vsel %vm75_vm0, %v72_v12, 0.0  ;;  %v107_v23 = vsel %vm75_vm0, %v99_v15, 0.0 }
  0x2e   :  { %v80_v21 = vadd.f32 %v79_v13, %v78_v18  ;;  %v106_v22 = vadd.f32 %v105_v17, %v104_v19 }
  0x30   :  { %v82_v24 = vadd.f32 %v81_v20, %v80_v21  ;;  %v108_v25 = vadd.f32 %v107_v23, %v106_v22 }
  0x32   :  { %83 = vadd.xlane.f32.xlu0 %v82_v24 }
  0x36   :  { %109 = vadd.xlane.f32.xlu0 %v108_v25 }
  0xbf   :  { %v84_v26 = vpop.xlane.xlu0 %83 }
  0xc0   :  { %v85_v27 = vrot.slane %v84_v26, 4 }
  0xc2   :  { %v86_v28 = vadd.f32 %v85_v27, %v84_v26 }
  0xc3   :  { %v110_v29 = vpop.xlane.xlu0 %109 }
  0xc4   :  { %v87_v30 = vrot.slane %v86_v28, 2  ;;  %v111_v31 = vrot.slane %v110_v29, 4 }
  0xc6   :  { %v112_v32 = vadd.f32 %v111_v31, %v110_v29  ;;  %v88_v33 = vadd.f32 %v87_v30, %v86_v28 }
  0xc8   :  { %v113_v34 = vrot.slane %v112_v32, 2  ;;  %v89_v35 = vrot.slane %v88_v33, 1 }
  0xca   :  { %v114_v36 = vadd.f32 %v113_v34, %v112_v32  ;;  %v90_v37 = vadd.f32 %v89_v35, %v88_v33 }
  0xcc   :  { %135 = vpush %v90_v37  ;;  %v115_v38 = vrot.slane %v114_v36, 1 }
  0xce   :  { %v116_v39 = vadd.f32 %v115_v38, %v114_v36 }
  0xd0   :  { %137 = vpush %v116_v39 }
  0xfd   :  { %s136_s1 = spop %135 }
  0xfe   :  { %93 = sst [smem:[#allocation9]] %s136_s1 }
 0x101   :  { %s138_s4 = spop %137 }
 0x102   :  { %119 = sst [smem:[#allocation9 + $0x1]] %s138_s4 }
 0x103   :  { %195 = shalt.err (!%p192_p4)
}
 0x104   :  { %s204_s12 = smov [#allocation9]  }
 0x105   :  { %127 = dma.smem_to_hbm %s204_s12, 16, %s266_s2, [#allocation6]  }
 0x106   :  { %200 = dma.done.wait [#allocation6], 16  }
 0x107   :  { %201 = vsyncadd [#allocation6], 4294967280 }
 0x108   :  { %131 = sfence }
 0x109   :  { %132 = vsyncpa [#allocation5], 1 }
 0x10a   :  { %133 = vsyncpa [#allocation8], 1 }
 0x10b   :  { %134 = vsyncpa [#allocation6], 1 }

</bundles_post_ra>
